<compile_context>
chip_gen: v6e
topology: v6e:2x2x1
jax: 0.10.0
libtpu: 0.0.40
codegen_flags: <defaults>
</compile_context>

<pallas_src>
import jax
import jax.numpy as jnp
import numpy as np
from jax.experimental import pallas as pl
from jax.experimental.pallas import tpu as pltpu


# ---------------------------------------------------------------------------
# Kernels
# ---------------------------------------------------------------------------
def _make_fused_kernel(radix, dim, hw):
    inv_hw = 1.0 / float(hw)

    def kernel(x_ref, w1_ref, shift_ref, w2_ref, o_ref):
        # x_ref: (Bt, R, C, HW) in the native activation dtype (bf16 stays
        # bf16 on the streaming path; only the tiny GAP/MLP math is f32).

        # ---- global average pool over (radix, spatial), f32 accumulation.
        # Per-radix slices are read from the already VMEM-resident input
        # buffer at point of use (no full-block value kept live).
        gap = None
        for r in range(radix):
            part = jnp.sum(x_ref[:, r, :, :], axis=-1, dtype=jnp.float32)  # (Bt, C)
            gap = part if gap is None else gap + part
        gap = gap * inv_hw                                                  # (Bt, C)

        # ---- fc1 (densified grouped 1x1 conv, BN scale folded) + shift + ReLU
        u = jnp.dot(gap, w1_ref[...], preferred_element_type=jnp.float32)  # (Bt, Din)
        u = jnp.maximum(u + shift_ref[...], 0.0)

        # ---- fc2: all radix splits fused into ONE MXU matmul (M = Bt rows).
        logits = jnp.dot(u, w2_ref[...], preferred_element_type=jnp.float32)  # (Bt, R*C)
        per_r = [logits[:, r * dim:(r + 1) * dim] for r in range(radix)]

        # ---- softmax over radix (sigmoid when radix == 1 -> SE block).
        if radix > 1:
            m = per_r[0]
            for r in range(1, radix):
                m = jnp.maximum(m, per_r[r])
            exps = [jnp.exp(p - m) for p in per_r]
            denom = exps[0]
            for r in range(1, radix):
                denom = denom + exps[r]
            inv = 1.0 / denom
            attn = [e * inv for e in exps]
        else:
            attn = [1.0 / (1.0 + jnp.exp(-per_r[0]))]

        # Cast attention weights to the activation dtype once (hoisted) so the
        # dominant streaming pass stays in the input dtype.  (Small precision
        # loss vs f32 multiply; the result is stored in the input dtype anyway.)
        attn = [a.astype(x_ref.dtype)[:, :, None] for a in attn]           # (Bt, C, 1)

        # ---- weighted sum over radix splits (second VMEM read pass over x).
        acc = x_ref[:, 0, :, :] * attn[0]
        for r in range(1, radix):
            acc = acc + x_ref[:, r, :, :] * attn[r]
        o_ref[...] = acc.astype(o_ref.dtype)

    return kernel


def _make_apply_kernel(radix):
    """Channel-tiled weighted-sum kernel for the two-phase fallback."""

    def kernel(x_ref, rc_ref, o_ref):
        # x_ref: (1, R, Tc, HW), rc_ref: (1, Tc, R), o_ref: (1, Tc, HW)
        acc = x_ref[0, 0] * rc_ref[0, :, 0:1].astype(x_ref.dtype)
        for r in range(1, radix):
            acc = acc + x_ref[0, r] * rc_ref[0, :, r:r + 1].astype(x_ref.dtype)
        o_ref[0, :, :] = acc.astype(o_ref.dtype)

    return kernel


# ---------------------------------------------------------------------------
# Sizing helpers
# ---------------------------------------------------------------------------
def _sublane_multiple(itemsize):
    return max(8, 32 // int(itemsize))


def _padded_bytes(shape, itemsize):
    s = list(shape)
    if len(s) == 1:
        s = [1] + s
    s[-1] = -(-s[-1] // 128) * 128
    s[-2] = -(-s[-2] // _sublane_multiple(itemsize)) * _sublane_multiple(itemsize)
    return int(np.prod(s)) * int(itemsize)


def _vmem_capacity_bytes():
    try:
        cap = int(pltpu.get_tpu_info().vmem_capacity_bytes)
        if cap > 0:
            return cap
    except Exception:
        pass
    return 64 << 20  # conservative default (v7x physical VMEM per TensorCore)


# ---------------------------------------------------------------------------
# Wrapper
# ---------------------------------------------------------------------------
def split_attention(x, w1_dense, bn_scale, bn_shift, w2_dense, *, dim, radix,
                    max_batch_tile=32, block_budget_bytes=None):
    B, Cin, H, W = x.shape
    assert Cin == radix * dim
    HW = H * W
    dim_inner = w1_dense.shape[0]
    assert w1_dense.shape == (dim_inner, dim)
    assert w2_dense.shape == (radix, dim, dim_inner)

    # Fold eval-mode BatchNorm scale into w1; keep only the shift as a bias.
    w1_t = (bn_scale.reshape(-1, 1) * w1_dense).T.astype(jnp.float32)        # (C, Din)
    w2_t = (w2_dense.transpose(2, 0, 1)
            .reshape(dim_inner, radix * dim).astype(jnp.float32))            # (Din, R*C)
    shift = bn_shift.reshape(1, dim_inner).astype(jnp.float32)

    # Native NCHW layout: (B, R*C, H, W) -> (B, R, C, HW) is a free metadata
    # reshape; no wrapper transposes, no dtype cast (bf16 stays bf16).
    xr = x.reshape(B, radix, dim, HW)

    itemsize = x.dtype.itemsize
    vmem_cap = _vmem_capacity_bytes()
    if block_budget_bytes is None:
        # ~1/3 of physical VMEM for pipelined blocks (~21 MiB on v7x's 64 MiB,
        # ~42 MiB on v5e/v6e's 128 MiB); rest is weights / temporaries / Mosaic
        # internal scratch headroom.
        block_budget_bytes = min(int(vmem_cap * 0.33), 44 << 20)

    w_bytes = (_padded_bytes(w1_t.shape, 4) + _padded_bytes(w2_t.shape, 4)
               + _padded_bytes(shift.shape, 4))
    in1 = _padded_bytes((radix, dim, HW), itemsize)   # per-batch input block
    out1 = _padded_bytes((dim, HW), itemsize)         # per-batch output block

    def _need(bt):
        # double-buffered in/out blocks + resident weights + in-kernel
        # temporaries (the weighted-sum value ~= one output block) + headroom.
        return 2 * bt * (in1 + out1) + w_bytes + bt * out1 + (2 << 20)

    bt = 0
    for cand in range(1, min(B, max_batch_tile) + 1):
        if B % cand:
            continue
        if B >= 2 and B // cand < 2:
            continue  # keep >= 2 grid steps so both v7x TensorCores get work
        if _need(cand) <= block_budget_bytes:
            bt = cand
    # TODO(synk): for B == 1 the parallel grid has a single step, so one v7x
    # TensorCore idles; a spatial split (pl.core_map or a second grid axis)
    # would be needed to use both cores for single-image inference.

    if bt == 0:
        # Per-batch block does not fit the VMEM budget: two-phase fallback.
        return _split_attention_two_phase(
            xr, w1_t, shift, w2_t, dim=dim, radix=radix, H=H, W=W,
            block_budget_bytes=block_budget_bytes, vmem_cap=vmem_cap)

    kernel = _make_fused_kernel(radix, dim, HW)
    vmem_limit = int(min(max(_need(bt) + (4 << 20), 32 << 20),
                         int(vmem_cap * 0.9)))

    out = pl.pallas_call(
        kernel,
        out_shape=jax.ShapeDtypeStruct((B, dim, HW), x.dtype),
        grid=(B // bt,),
        in_specs=[
            pl.BlockSpec((bt, radix, dim, HW), lambda i: (i, 0, 0, 0)),
            pl.BlockSpec(w1_t.shape, lambda i: (0, 0)),
            pl.BlockSpec(shift.shape, lambda i: (0, 0)),
            pl.BlockSpec(w2_t.shape, lambda i: (0, 0)),
        ],
        out_specs=pl.BlockSpec((bt, dim, HW), lambda i: (i, 0, 0)),
        compiler_params=pltpu.CompilerParams(
            dimension_semantics=("parallel",),
            vmem_limit_bytes=vmem_limit),
    )(xr, w1_t, shift, w2_t)

    return out.reshape(B, dim, H, W)


def _split_attention_two_phase(xr, w1_t, shift, w2_t, *, dim, radix, H, W,
                               block_budget_bytes, vmem_cap):
    """Fallback when a per-batch block exceeds the VMEM budget.

    Phase 1 (plain XLA, one HBM read of x): GAP -> fc1 -> ReLU -> fc2 ->
    softmax over radix.  Phase 2 (Pallas): channel-tiled weighted sum.
    """
    B = xr.shape[0]
    HW = H * W
    itemsize = xr.dtype.itemsize

    gap = jnp.sum(xr, axis=(1, 3), dtype=jnp.float32) / float(HW)          # (B, C)
    u = jnp.maximum(gap @ w1_t + shift, 0.0)                               # (B, Din)
    logits = (u @ w2_t).reshape(B, radix, dim)                             # (B, R, C)
    rc = jax.nn.softmax(logits, axis=1) if radix > 1 else jax.nn.sigmoid(logits)
    rc_t = rc.transpose(0, 2, 1).astype(jnp.float32)                       # (B, C, R)

    sub = _sublane_multiple(itemsize)

    def need(tc):
        i1 = _padded_bytes((radix, tc, HW), itemsize)
        o1 = _padded_bytes((tc, HW), itemsize)
        return 2 * (i1 + o1) + o1 + (2 << 20)

    cands = sorted({dim} | {c for c in range(sub, dim, sub) if dim % c == 0})
    tc = None
    for c in cands:
        if need(c) <= block_budget_bytes:
            tc = c  # ascending -> keeps largest fitting tile
    if tc is None:
        # TODO(synk): also tile the spatial axis if even the smallest channel
        # tile exceeds VMEM; not needed for realistic ResNeSt shapes.
        tc = cands[0]

    kernel = _make_apply_kernel(radix)
    vmem_limit = int(min(max(need(tc) + (4 << 20), 32 << 20), int(vmem_cap * 0.9)))

    out = pl.pallas_call(
        kernel,
        out_shape=jax.ShapeDtypeStruct((B, dim, HW), xr.dtype),
        grid=(B, dim // tc),
        in_specs=[
            pl.BlockSpec((1, radix, tc, HW), lambda b, c: (b, 0, c, 0)),
            pl.BlockSpec((1, tc, radix), lambda b, c: (b, c, 0)),
        ],
        out_specs=pl.BlockSpec((1, tc, HW), lambda b, c: (b, c, 0)),
        compiler_params=pltpu.CompilerParams(
            dimension_semantics=("parallel", "parallel"),
            vmem_limit_bytes=vmem_limit),
    )(xr, rc_t)

    return out.reshape(B, dim, H, W)


# ---------------------------------------------------------------------------
# Parameter glue (densified grouped 1x1 convs, folded Rearrange, eval-mode BN)
# ---------------------------------------------------------------------------
def build_params(key, dim, dim_inner, radix, groups):
    """Deterministic parameter init mirroring the module's __init__ shapes."""
    cpg = dim // groups
    din_pg = dim_inner // groups
    k1, k2, k3, k4, k5, k6 = jax.random.split(key, 6)

    conv1_w = jax.random.normal(k1, (dim_inner, cpg), jnp.float32) / np.sqrt(cpg)
    conv2_w = jax.random.normal(k2, (dim * radix, din_pg), jnp.float32) / np.sqrt(din_pg)

    # BatchNorm evaluated in inference mode with deterministic stats.
    # TODO(synk): training-mode BatchNorm (batch statistics) not modeled; eval-mode affine only.
    gamma = 1.0 + 0.1 * jax.random.normal(k3, (dim_inner,), jnp.float32)
    beta = 0.05 * jax.random.normal(k4, (dim_inner,), jnp.float32)
    r_mean = 0.1 * jax.random.normal(k5, (dim_inner,), jnp.float32)
    r_var = 1.0 + 0.1 * jnp.abs(jax.random.normal(k6, (dim_inner,), jnp.float32))
    eps = 1e-5
    bn_scale = gamma / jnp.sqrt(r_var + eps)
    bn_shift = beta - r_mean * bn_scale

    # Densify grouped conv1 -> (dim_inner, dim), block-diagonal over groups.
    w1_dense = jnp.zeros((dim_inner, dim), jnp.float32)
    for gi in range(groups):
        w1_dense = w1_dense.at[gi * din_pg:(gi + 1) * din_pg,
                               gi * cpg:(gi + 1) * cpg].set(
            conv1_w[gi * din_pg:(gi + 1) * din_pg])

    # Densify grouped conv2 and fold in Rearrange 'b (g r c) 1 1 -> b r (g c)'
    # -> weight of shape (radix, dim, dim_inner).
    w2_dense = jnp.zeros((radix, dim, dim_inner), jnp.float32)
    for gi in range(groups):
        for r in range(radix):
            o0 = gi * radix * cpg + r * cpg
            w2_dense = w2_dense.at[r, gi * cpg:(gi + 1) * cpg,
                                   gi * din_pg:(gi + 1) * din_pg].set(
                conv2_w[o0:o0 + cpg])

    return w1_dense, bn_scale, bn_shift, w2_dense


def reference(x, w1_dense, bn_scale, bn_shift, w2_dense, *, dim, radix):
    """Pure-JAX mirror of the PyTorch forward (with densified weights)."""
    B, Cin, H, W = x.shape
    xr = x.reshape(B, radix, dim, H * W)
    gap = xr.sum(axis=(1, 3)) / (H * W)                 # == mean_{r,h,w}(x*radix)
    u = gap @ w1_dense.T
    u = jnp.maximum(u * bn_scale + bn_shift, 0.0)
    logits = jnp.einsum('bi,rci->brc', u, w2_dense)
    rc = jax.nn.softmax(logits, axis=1) if radix > 1 else jax.nn.sigmoid(logits)
    out = jnp.einsum('brcs,brc->bcs', xr, rc)
    return out.reshape(B, dim, H, W)


# ---------------------------------------------------------------------------
# Self test
# ---------------------------------------------------------------------------
if __name__ == "__main__":
    def run_case(B, dim, radix, groups, H, W, dtype, subkey, atol, rtol, **kw):
        assert dim % (groups * radix) == 0
        dim_inner = dim * radix // 4
        kx, kp = jax.random.split(subkey)
        x = jax.random.normal(kx, (B, radix * dim, H, W), jnp.float32).astype(dtype)
        w1, sc, sh, w2 = build_params(kp, dim, dim_inner, radix, groups)

        out = split_attention(x, w1, sc, sh, w2, dim=dim, radix=radix, **kw)
        out = jax.block_until_ready(out)

        ref = reference(x.astype(jnp.float32), w1, sc, sh, w2, dim=dim, radix=radix)
        np.testing.assert_allclose(np.asarray(out.astype(jnp.float32)),
                                   np.asarray(ref), atol=atol, rtol=rtol)

    root = jax.random.PRNGKey(0)
    keys = jax.random.split(root, 4)

    # (1) small f32 smoke test, radix-softmax path, grid of 2 batch steps.
    run_case(2, 8, 2, 2, 16, 16, jnp.float32, keys[0], 1e-4, 1e-4)
    # (2) realistic late-stage ResNeSt shape (dim=128, 14x14, bf16) with
    #     batch tiling (Bt=2 -> grid=2, feeds both v7x TensorCores).
    run_case(4, 128, 2, 2, 14, 14, jnp.bfloat16, keys[1], 5e-2, 5e-2)
    # (3) radix == 1 (Squeeze-Excitation / sigmoid) path.
    run_case(2, 16, 1, 1, 8, 8, jnp.float32, keys[2], 1e-4, 1e-4)
    # (4) force the two-phase VMEM-overflow fallback with a tiny block budget.
    run_case(2, 32, 2, 1, 16, 16, jnp.float32, keys[3], 1e-4, 1e-4,
             block_budget_bytes=1 << 20)

    print("KERNEL_OK")
</pallas_src>

<mosaic_0001>
module attributes {stable_mosaic.version = 11 : i64} {
  func.func @kernel(%arg0: i32, %arg1: memref<1x2x8x256xf32, #tpu.memory_space<vmem>>, %arg2: memref<8x4xf32, #tpu.memory_space<vmem>>, %arg3: memref<1x4xf32, #tpu.memory_space<vmem>>, %arg4: memref<4x16xf32, #tpu.memory_space<vmem>>, %arg5: memref<1x8x256xf32, #tpu.memory_space<vmem>>) attributes {dimension_semantics = [#tpu.dimension_semantics<parallel>], iteration_bounds = array<i64: 2>, scalar_prefetch = 0 : i64, scratch_operands = 0 : i64, tpu.core_type = #tpu.core_type<tc>, window_params = [{transform_indices = @transform_0, window_bounds = array<i64: 1, 2, 8, 256>}, {pipeline_mode = #tpu.pipeline_mode<synchronous>, transform_indices = @transform_1, window_bounds = array<i64: 8, 4>}, {pipeline_mode = #tpu.pipeline_mode<synchronous>, transform_indices = @transform_2, window_bounds = array<i64: 1, 4>}, {pipeline_mode = #tpu.pipeline_mode<synchronous>, transform_indices = @transform_3, window_bounds = array<i64: 4, 16>}, {transform_indices = @transform_4, window_bounds = array<i64: 1, 8, 256>}]} {
    %c0 = arith.constant 0 : index
    %c0_0 = arith.constant 0 : index
    %c0_1 = arith.constant 0 : index
    %c0_2 = arith.constant 0 : index
    %0 = vector.load %arg1[%c0, %c0_0, %c0_1, %c0_2] : memref<1x2x8x256xf32, #tpu.memory_space<vmem>>, vector<1x1x8x256xf32>
    %1 = vector.shape_cast %0 : vector<1x1x8x256xf32> to vector<1x8x256xf32>
    %cst = arith.constant dense<0.000000e+00> : vector<1x8xf32>
    %2 = vector.multi_reduction <add>, %1, %cst [2] : vector<1x8x256xf32> to vector<1x8xf32>
    %c0_3 = arith.constant 0 : index
    %c1 = arith.constant 1 : index
    %c0_4 = arith.constant 0 : index
    %c0_5 = arith.constant 0 : index
    %3 = vector.load %arg1[%c0_3, %c1, %c0_4, %c0_5] : memref<1x2x8x256xf32, #tpu.memory_space<vmem>>, vector<1x1x8x256xf32>
    %4 = vector.shape_cast %3 : vector<1x1x8x256xf32> to vector<1x8x256xf32>
    %cst_6 = arith.constant dense<0.000000e+00> : vector<1x8xf32>
    %5 = vector.multi_reduction <add>, %4, %cst_6 [2] : vector<1x8x256xf32> to vector<1x8xf32>
    %6 = arith.addf %2, %5 : vector<1x8xf32>
    %cst_7 = arith.constant 3.906250e-03 : f32
    %7 = vector.broadcast %cst_7 : f32 to vector<1x8xf32>
    %8 = arith.mulf %6, %7 : vector<1x8xf32>
    %c0_8 = arith.constant 0 : index
    %c0_9 = arith.constant 0 : index
    %9 = vector.load %arg2[%c0_8, %c0_9] : memref<8x4xf32, #tpu.memory_space<vmem>>, vector<8x4xf32>
    %cst_10 = arith.constant dense<0.000000e+00> : vector<1x4xf32>
    %10 = tpu.matmul %8, %9, %cst_10 {dimension_numbers = #tpu.dot_dimension_numbers<[1], [0], [0], [1], [0, 0, 1, 1], [], []>} : vector<1x8xf32>, vector<8x4xf32>, vector<1x4xf32> -> vector<1x4xf32>
    %c0_11 = arith.constant 0 : index
    %c0_12 = arith.constant 0 : index
    %11 = vector.load %arg3[%c0_11, %c0_12] : memref<1x4xf32, #tpu.memory_space<vmem>>, vector<1x4xf32>
    %12 = arith.addf %10, %11 : vector<1x4xf32>
    %cst_13 = arith.constant 0.000000e+00 : f32
    %13 = vector.broadcast %cst_13 : f32 to vector<1x4xf32>
    %14 = arith.maximumf %12, %13 : vector<1x4xf32>
    %c0_14 = arith.constant 0 : index
    %c0_15 = arith.constant 0 : index
    %15 = vector.load %arg4[%c0_14, %c0_15] : memref<4x16xf32, #tpu.memory_space<vmem>>, vector<4x16xf32>
    %cst_16 = arith.constant dense<0.000000e+00> : vector<1x16xf32>
    %16 = tpu.matmul %14, %15, %cst_16 {dimension_numbers = #tpu.dot_dimension_numbers<[1], [0], [0], [1], [0, 0, 1, 1], [], []>} : vector<1x4xf32>, vector<4x16xf32>, vector<1x16xf32> -> vector<1x16xf32>
    %17 = vector.extract_strided_slice %16 {offsets = [0, 0], sizes = [1, 8], strides = [1, 1]} : vector<1x16xf32> to vector<1x8xf32>
    %18 = vector.extract_strided_slice %16 {offsets = [0, 8], sizes = [1, 8], strides = [1, 1]} : vector<1x16xf32> to vector<1x8xf32>
    %19 = arith.maximumf %17, %18 : vector<1x8xf32>
    %20 = arith.subf %17, %19 : vector<1x8xf32>
    %21 = math.exp %20 : vector<1x8xf32>
    %22 = arith.subf %18, %19 : vector<1x8xf32>
    %23 = math.exp %22 : vector<1x8xf32>
    %24 = arith.addf %21, %23 : vector<1x8xf32>
    %cst_17 = arith.constant 1.000000e+00 : f32
    %25 = vector.broadcast %cst_17 : f32 to vector<1x8xf32>
    %26 = arith.divf %25, %24 : vector<1x8xf32>
    %27 = arith.mulf %21, %26 : vector<1x8xf32>
    %28 = arith.mulf %23, %26 : vector<1x8xf32>
    %29 = vector.shape_cast %27 : vector<1x8xf32> to vector<1x8x1xf32>
    %30 = vector.shape_cast %28 : vector<1x8xf32> to vector<1x8x1xf32>
    %c0_18 = arith.constant 0 : index
    %c0_19 = arith.constant 0 : index
    %c0_20 = arith.constant 0 : index
    %c0_21 = arith.constant 0 : index
    %31 = vector.load %arg1[%c0_18, %c0_19, %c0_20, %c0_21] : memref<1x2x8x256xf32, #tpu.memory_space<vmem>>, vector<1x1x8x256xf32>
    %32 = vector.shape_cast %31 : vector<1x1x8x256xf32> to vector<1x8x256xf32>
    %33 = vector.broadcast %29 : vector<1x8x1xf32> to vector<1x8x256xf32>
    %34 = arith.mulf %32, %33 : vector<1x8x256xf32>
    %c0_22 = arith.constant 0 : index
    %c1_23 = arith.constant 1 : index
    %c0_24 = arith.constant 0 : index
    %c0_25 = arith.constant 0 : index
    %35 = vector.load %arg1[%c0_22, %c1_23, %c0_24, %c0_25] : memref<1x2x8x256xf32, #tpu.memory_space<vmem>>, vector<1x1x8x256xf32>
    %36 = vector.shape_cast %35 : vector<1x1x8x256xf32> to vector<1x8x256xf32>
    %37 = vector.broadcast %30 : vector<1x8x1xf32> to vector<1x8x256xf32>
    %38 = arith.mulf %36, %37 : vector<1x8x256xf32>
    %39 = arith.addf %34, %38 : vector<1x8x256xf32>
    %c0_26 = arith.constant 0 : index
    %c0_27 = arith.constant 0 : index
    %c0_28 = arith.constant 0 : index
    %40 = vector.load %arg5[%c0_26, %c0_27, %c0_28] : memref<1x8x256xf32, #tpu.memory_space<vmem>>, vector<1x8x256xf32>
    tpu.vector_store %arg5[%c0_26, %c0_27, %c0_28], %39 {strides = array<i32>} : memref<1x8x256xf32, #tpu.memory_space<vmem>>, vector<1x8x256xf32>,
    return
  }
  func.func @transform_0(%arg0: i32) -> (i32, i32, i32, i32) {
    %c0_i32 = arith.constant 0 : i32
    %c0_i32_0 = arith.constant 0 : i32
    %c0_i32_1 = arith.constant 0 : i32
    %c0_i32_2 = arith.constant 0 : i32
    return %arg0, %c0_i32, %c0_i32_0, %c0_i32_1 : i32, i32, i32, i32
  }
  func.func @transform_1(%arg0: i32) -> (i32, i32) {
    %c0_i32 = arith.constant 0 : i32
    %c0_i32_0 = arith.constant 0 : i32
    %c0_i32_1 = arith.constant 0 : i32
    return %c0_i32, %c0_i32_0 : i32, i32
  }
  func.func @transform_2(%arg0: i32) -> (i32, i32) {
    %c0_i32 = arith.constant 0 : i32
    %c0_i32_0 = arith.constant 0 : i32
    %c0_i32_1 = arith.constant 0 : i32
    return %c0_i32, %c0_i32_0 : i32, i32
  }
  func.func @transform_3(%arg0: i32) -> (i32, i32) {
    %c0_i32 = arith.constant 0 : i32
    %c0_i32_0 = arith.constant 0 : i32
    %c0_i32_1 = arith.constant 0 : i32
    return %c0_i32, %c0_i32_0 : i32, i32
  }
  func.func @transform_4(%arg0: i32) -> (i32, i32, i32) {
    %c0_i32 = arith.constant 0 : i32
    %c0_i32_0 = arith.constant 0 : i32
    %c0_i32_1 = arith.constant 0 : i32
    return %arg0, %c0_i32, %c0_i32_0 : i32, i32, i32
  }
}

</mosaic_0001>

<bundles_post_ra>
// kernel: tpu_custom_call.1
= control target key start
LH: loop header
LB: loop body
LE: loop exit
PB: predicated region body
PF: predicated region fallthrough
CT: control target
= control target key end

     0   :  { %9 = vsyncpa [#allocation3], 0  ;;  %s919_s0 = inlined_call_operand.hbm [shape: f32[2,2,8,256], index: 0, kind: input, shape index: {}]   ;;  %s920_s1 = inlined_call_operand.vmem [shape: f32[8,4], index: 1, kind: input, shape index: {}]   ;;  %s921_s2 = inlined_call_operand.vmem [shape: f32[1,4], index: 2, kind: input, shape index: {}]   ;;  %s922_s3 = inlined_call_operand.vmem [shape: f32[4,16], index: 3, kind: input, shape index: {}]   ;;  %s923_s4 = inlined_call_operand.hbm [shape: f32[2,8,256], index: 4, kind: output, shape index: {}]  }
   0x1   :  { %11 = vsyncpa [#allocation3 + $0x1], 0 }
   0x2   :  { %12 = vsyncpa [#allocation4], 0 }
   0x3   :  { %14 = vsyncpa [#allocation4 + $0x1], 0  ;;  %s747_s15 = smov 0   ;;  %s749_s16 = smov 0  }
   0x4   :  { %s751_s17 = smov 0   ;;  %s753_s18 = smov 0  }
   0x5 LB: > { %s768_s19 = sadd.s32 4294967295, %s712_s18   ;;  %s527_s20 = sadd.s32 4294967294, %s712_s18   ;;  %s712_s18 = sphi %s753_s18, %s938_s18   ;;  %s708_s17 = sphi %s751_s17, %s937_s17   ;;  %s704_s16 = sphi %s749_s16, %s936_s16   ;;  %s700_s15 = sphi %s747_s15, %s935_s15  }
   0x6   : > { %s772_s21 = sadd.s32 1, %s712_s18   ;;  %s27_s22 = sadd.s32 1, %s708_s17 }
   0x7   : > { %s24_s23 = ssub.s32 %s712_s18, %s772_s21  ;;  %p34_p0 = scmp.ne.s32.totalorder %s708_s17, %s704_s16 }
   0x8   : > { %p25_p1 = scmp.eq.s32.totalorder %s24_s23, 0  ;;  %p35_p2 = scmp.eq.s32.totalorder %s712_s18, 0 }
   0x9   : > { %p40_p3 = scmp.ne.s32.totalorder %s704_s16, %s700_s15  ;;  %p41_p4 = scmp.eq.s32.totalorder %s768_s19, 0 }
   0xa   : > { %s784_s24 = scalar_select %p25_p1, %s708_s17, %s27_s22  }
   0xb   : > { %p786_p5 = por %p35_p2, %p34_p0  ;;  %p790_p6 = por %p41_p4, %p40_p3 }
   0xc   : > { %p127_p7 = scmp.eq.s32.totalorder %s768_s19, 1  ;;  %p133_p8 = scmp.eq.s32.totalorder %s527_s20, 1 }
   0xd   : > { %s927_s26 = scalar_select %p790_p6, 1, 0 }
   0xe   : > { %p574_p10 = scmp.lt.s32.totalorder %s712_s18, 2  ;;  %p797_p11 = por %p127_p7, %p34_p0 }
   0xf   : > { %p801_p12 = por %p133_p8, %p40_p3  ;;  %s162_s29 = sand.u32 1, %s708_s17  }
  0x10   : > { %s928_s27 = scalar_select %p797_p11, 1, 0 }
  0x11   : > { %s929_s28 = scalar_select %p801_p12, 1, 0 }
  0x12   : > { %s546_s30 = sshll.u32 %s712_s18, 9  ;;  %s530_s5 = sshll.u32 %s162_s29, 5 }
  0x13   : > { %s810_s8 = scalar_lea.hbm %s919_s0, %s546_s30  ;;  %s166_s9 = scalar_lea.vmem [#allocation2], %s530_s5 }
  0x14   : > { %s173_s10 = sshll.u32 %s166_s9, 4  ;;  %p814_p13 = pnand %p574_p10, %p786_p5  ;;  %s818_s10 = int_to_ptr.vmem [resolvable:$true] %s173_s10 }
  0x15   : > { %s820_s12 = scalar_lea.sflag [#allocation3], %s162_s29  ;;  %s620_s13 = scalar_lea.hbm %s810_s8, 512 }
  0x16   : > { %p621_p0 = scmp.ne.s32.totalorder %s810_s8, %s620_s13  ;;  %p622_p1 = pneg %p814_p13 }
  0x17   : > { %s625_s22 = scalar_lea.hbm %s919_s0, 1024  ;;  %p626_p4 = scmp.lt.s32.totalorder %s810_s8, %s919_s0 }
  0x18   : > { %p623_p2 = pnand %p622_p1, %p621_p0  ;;  %p627_p5 = scmp.lt.s32.totalorder %s625_s22, %s620_s13 }
  0x1a   : > { %p624_p3 = pneg %p623_p2  ;;  %p628_p7 = por %p627_p5, %p626_p4 }
  0x1c   : > { %p629_p8 = pnand %p628_p7, %p624_p3 }
  0x1e   : > { %632 = shalt.err (!%p629_p8)
}
  0x1f   : > { %s633_s29 = scalar_lea.vmem %s818_s10, 512  ;;  %s714_s30 = smov [#allocation2]  }
  0x20   : > { %p634_p10 = scmp.ne.s32.totalorder %s818_s10, %s633_s29  ;;  %s638_s5 = sshll.u32 %s714_s30, 4  ;;  %s639_s5 = int_to_ptr.vmem [resolvable:$false] %s638_s5 }
  0x21   : > { %s640_s6 = scalar_lea.vmem %s639_s5, 1024  ;;  %p641_p2 = scmp.lt.s32.totalorder %s818_s10, %s639_s5 }
  0x22   : > { %p636_p9 = pnand %p634_p10, %p622_p1  ;;  %p642_p12 = scmp.lt.s32.totalorder %s640_s6, %s633_s29 }
  0x24   : > { %p637_p0 = pneg %p636_p9  ;;  %p643_p11 = por %p642_p12, %p641_p2 }
  0x26   : > { %p644_p6 = pnand %p643_p11, %p637_p0 }
  0x28   : > { %647 = shalt.err (!%p644_p6)
}
  0x29   : > { %s715_s7 = smov 256   ;;  %s716_s9 = smov 16  }
  0x2a   : > { %569 = dma.hbm_to_vmem [thread:$0]  (!%p814_p13), %s810_s8, 512, %s818_s10, %s820_s12, %s715_s7, %s715_s7, %s716_s9  }
  0x2b   : > { %p533_p9 = scmp.ge.s32.totalorder %s712_s18, 1  ;;  %p181_p1 = scmp.lt.s32.totalorder %s712_s18, 3 }
  0x2d   : > { %p182_p3 = pnand %p533_p9, %p181_p1 }
  0x2e   : > { %s844_s13 = sand.u32 (!%p182_p3), 1, %s704_s16   ;;  %p931_p6 = scmp.ne.s32.totalorder (!%p182_p3), %s927_s26, 0 }
  0x2f   : > { %185 = sbr.rel (%p182_p3) target bundleno = 1226 (0x4ca), region = 36  ;;  %s534_s14 = sshll.u32 (!%p182_p3), %s844_s13, 5 }
  0x30   : > { %s188_s20 = scalar_lea.sflag (!%p182_p3), [#allocation3], %s844_s13  ;;  %s191_s22 = scalar_lea.vmem (!%p182_p3), [#allocation2], %s534_s14 }
  0x34   : > { %691 = dma.done.wait (%p931_p6), %s188_s20, 512  }
  0x35   : > { %693 = vsyncadd (%p931_p6), %s188_s20, 4294966784  ;;  %v852_v0 = vld [vmem:[%s191_s22] sm:$0xff]  ;;  %v854_v1 = vld [vmem:[%s191_s22 + $0x8] sm:$0xff]  ;;  %v717_v6 = vmov 0.0   ;;  %vm718_vm0 = vmmov 0   ;;  %v232_v8 = vlaneseq  ;;  %vm238_vm1 = vcmask 64512  }
  0x36   : > { %v856_v2 = vld [vmem:[%s191_s22 + $0x10] sm:$0xff]  ;;  %v218_v3 = vadd.f32 %v854_v1, %v852_v0  ;;  %v860_v4 = vld [vmem:[%s191_s22 + $0x18] sm:$0xff]  ;;  %552 = vmatprep.subr.mxu0 %v717_v6  ;;  %v229_v7 = vld [vmem:[%s920_s1] sm:$0xff]  ;;  %557 = vmatprep.subr.mxu1 %v717_v6  ;;  %vm317_vm2 = vcmask 1043456   ;;  %vm313_vm3 = vcmask 31744   ;;  %s719_s25 = smov 120  }
  0x37   : > { %v224_v5 = vadd.f32 %v860_v4, %v856_v2  ;;  %553 = vmatpush3.msra.mxu0 %v229_v7  ;;  %554 = vmatprep.mubr.msk.f32.mxu0 %vm718_vm0, %v717_v6  ;;  %v233_v10 = vand.u32 127, %v232_v8  ;;  %v235_v11 = vshrl.u32 %v232_v8, 7  ;;  %v312_v17 = vld [vmem:[%s922_s3] sm:$0xf]  ;;  %s720_s29 = smov 8   ;;  %s535_s30 = sshll.u32 %s844_s13, 4 }
  0x38   : > { %219 = vadd.xlane.f32.xlu0 %v218_v3  ;;  %559 = vmatprep.mubr.msk.f32.mxu1 %vm718_vm0, %v717_v6  ;;  %v230_v18 = vld [vmem:[%s921_s2] sm:$0x1]  ;;  %s547_s5 = sshll.u32 %s768_s19, 8  ;;  %s215_s6 = scalar_lea.vmem [#allocation5], %s535_s30 }
  0x39   : > { %v236_v13 = vsub.s32 %v233_v10, %v235_v11  ;;  %558 = vmatpush3.msk.msra.mxu1 %vm317_vm2, %v312_v17  ;;  %v421_v36 = vsub.s32 0, %v235_v11  ;;  %s457_s7 = sshll.u32 %s215_s6, 4  ;;  %s882_s20 = scalar_lea.hbm %s923_s4, %s547_s5  ;;  %s458_s7 = int_to_ptr.vmem [resolvable:$true] %s457_s7 }
  0x3a   : > { %s443_s19 = scalar_lea.sflag [#allocation4], %s844_s13  ;;  %s648_s22 = scalar_lea.vmem %s458_s7, 256 }
  0x3b   : > { %p649_p11 = scmp.ne.s32.totalorder %s458_s7, %s648_s22  ;;  %p932_p12 = scmp.ne.s32.totalorder %s928_s27, 0 }
  0x3c   : > { %225 = vadd.xlane.f32.xlu0 %v224_v5  ;;  %s721_s26 = smov [#allocation5]  }
  0x3d   : > { %p650_p13 = pnand %p649_p11, %p932_p12  ;;  %s652_s8 = sshll.u32 %s721_s26, 4  ;;  %s653_s8 = int_to_ptr.vmem [resolvable:$false] %s652_s8 }
  0x3e   : > { %s654_s10 = scalar_lea.vmem %s653_s8, 512  ;;  %p655_p5 = scmp.lt.s32.totalorder %s458_s7, %s653_s8 }
  0x3f   : > { %p651_p4 = pneg %p650_p13  ;;  %p656_p7 = scmp.lt.s32.totalorder %s654_s10, %s648_s22 }
  0x41   : > { %p657_p8 = por %p656_p7, %p655_p5 }
  0x43   : > { %p658_p10 = pnand %p657_p8, %p651_p4 }
  0xc1   : > { %v220_v9 = vpop.xlane.xlu0 %219 }
  0xc5   : > { %v226_v12 = vpop.xlane.xlu0 %225 }
  0xc6   : > { %v227_v14 = vadd.f32 %v226_v12, %v220_v9 }
  0xc8   : > { %v228_v15 = vmul.f32 0.00390625, %v227_v14 }
  0xca   : > { %v237_v16 = vrot.slane %v228_v15, %v236_v13 }
  0xcc   : > { %555 = vmatmul.mubr.msk.f32.vlgmr.msra.gmra.mxu0 %vm238_vm1, %v237_v16 }
 0x18c   : > { %v307_v19 = vpop.f32.mrf.mxu0 }
 0x18d   : > { %v308_v20 = vadd.f32 %v307_v19, %v230_v18 }
 0x18e   : > { %v556_v21 = vpop.f32.mrf.mxu0 }
 0x18f   : > { %v311_v22 = vmax.f32 %v308_v20, 0.0 }
 0x191   : > { %560 = vmatmul.mubr.msk.f32.vlgmr.msra.gmra.mxu1 %vm313_vm3, %v311_v22 }
 0x251   : > { %v387_v23 = vpop.f32.mrf.mxu1 }
 0x252   : > { %392 = vrot.lane.b32.xlu1 %v387_v23, %s719_s25 }
 0x253   : > { %v561_v24 = vpop.f32.mrf.mxu1 }
 0x2c4   : > { %v393_v25 = vpop.permute.xlu1 %392 }
 0x2c5   : > { %v395_v26 = vmax.f32 %v387_v23, %v393_v25 }
 0x2c7   : > { %400 = vrot.lane.b32.xlu1 %v395_v26, %s720_s29  ;;  %v396_v31 = vsub.f32 %v387_v23, %v395_v26 }
 0x2c9   : > { %v397_v32 = vmul.f32 1.442695, %v396_v31 }
 0x339   : > { %v401_v27 = vpop.permute.xlu1 %400 }
 0x33a   : > { %v403_v28 = vsub.f32 %v387_v23, %v401_v27 }
 0x33c   : > { %v404_v29 = vmul.f32 1.442695, %v403_v28 }
 0x33e   : > { %614 = vpow2.f32 %v404_v29 }
 0x33f   : > { %616 = vpow2.f32 %v397_v32 }
 0x34b   : > { %v615_v30 = vpop.eup %614 }
 0x34c   : > { %407 = vrot.lane.b32.xlu0 %v615_v30, %s719_s25  ;;  %v617_v33 = vpop.eup %616 }
 0x3be   : > { %v408_v34 = vpop.permute.xlu0 %407 }
 0x3bf   : > { %v410_v35 = vadd.f32 %v617_v33, %v408_v34 }
 0x3c1   : > { %618 = vrcp.f32 %v410_v35 }
 0x3ce   : > { %v619_v37 = vpop.eup %618 }
 0x3cf   : > { %415 = vrot.lane.b32.xlu1 %v619_v37, %s720_s29  ;;  %v413_v38 = vmul.f32 %v619_v37, %v617_v33 }
 0x3d1   : > { %v422_v39 = vrot.slane %v413_v38, %v421_v36 }
 0x3d3   : > { %424 = vbcast.lane.b32.xlu1 %v422_v39, 256 }
 0x441   : > { %v416_v40 = vpop.permute.xlu1 %415 }
 0x442   : > { %v418_v41 = vmul.f32 %v615_v30, %v416_v40 }
 0x444   : > { %v429_v42 = vrot.slane %v418_v41, %v421_v36 }
 0x445   : > { %v425_v43 = vpop.permute.xlu1 %424 }
 0x446   : > { %432 = vbcast.lane.b32.xlu1 %v429_v42, 264  ;;  %v434_v45 = vmul.f32 %v425_v43, %v852_v0  ;;  %v435_v46 = vmul.f32 %v425_v43, %v854_v1 }
 0x4b8   : > { %v433_v44 = vpop.permute.xlu1 %432 }
 0x4b9   : > { %v436_v47 = vmul.f32 %v856_v2, %v433_v44  ;;  %v437_v48 = vmul.f32 %v860_v4, %v433_v44 }
 0x4bb   : > { %v438_v49 = vadd.f32 %v436_v47, %v434_v45  ;;  %v439_v50 = vadd.f32 %v437_v48, %v435_v46 }
 0x4bd   : > { %440 = vst [vmem:[%s215_s6] sm:$0xff] %v438_v49  ;;  %441 = vst [vmem:[%s215_s6 + $0x8] sm:$0xff] %v439_v50 }
 0x4be   : > { %661 = shalt.err (!%p658_p10)
}
 0x4bf   : > { %s662_s11 = scalar_lea.hbm %s882_s20, 256  ;;  %s666_s23 = scalar_lea.hbm %s923_s4, 512 }
 0x4c0   : > { %p663_p0 = scmp.ne.s32.totalorder %s882_s20, %s662_s11  ;;  %p667_p1 = scmp.lt.s32.totalorder %s882_s20, %s923_s4 }
 0x4c1   : > { %p668_p3 = scmp.lt.s32.totalorder %s666_s23, %s662_s11 }
 0x4c2   : > { %p664_p2 = pnand %p663_p0, %p932_p12 }
 0x4c3   : > { %p669_p6 = por %p668_p3, %p667_p1 }
 0x4c4   : > { %p665_p9 = pneg %p664_p2 }
 0x4c6   : > { %p670_p11 = pnand %p669_p6, %p665_p9 }
 0x4c8   : > { %673 = shalt.err (!%p670_p11)
}
 0x4c9   : > { %564 = dma.vmem_to_hbm [thread:$0]  (%p932_p12), %s458_s7, 256, %s882_s20, %s443_s19  }
 0x4ca PF: > { %s469_s30 = sand.u32 1, %s700_s15   ;;  %p933_p13 = scmp.ne.s32.totalorder %s929_s28, 0 }
 0x4cb   : > { %p934_p4 = scmp.ge.s32.totalorder %s712_s18, 2  ;;  %s470_s5 = scalar_lea.sflag [#allocation4], %s469_s30 }
 0x4cd   : > { %p571_p5 = pnand %p934_p4, %p933_p13 }
 0x4cf   : > { %p572_p7 = pneg %p571_p5 }
 0x4d1   : > { %695 = dma.done.wait (%p572_p7), %s470_s5, 256  }
 0x4d2   : > { %697 = vsyncadd (%p572_p7), %s470_s5, 4294967040  ;;  %p17_p8 = scmp.ge.s32.totalorder %s772_s21, 4   ;;  %s935_s15 = smov %s704_s16 }
 0x4d3   : > { %s936_s16 = smov %s708_s17  ;;  %s937_s17 = smov %s784_s24 }
 0x4d4   : > { %s938_s18 = smov %s772_s21  ;;  %19 = sbr.rel (!%p17_p8) target bundleno = 5 (0x5), region = 82 }
 0x4d9   :  { %475 = vsyncpa [#allocation3], 1 }
 0x4da   :  { %477 = vsyncpa [#allocation3 + $0x1], 1 }
 0x4db   :  { %478 = vsyncpa [#allocation4], 1 }
 0x4dc   :  { %480 = vsyncpa [#allocation4 + $0x1], 1 }

</bundles_post_ra>
